<compile_context>
chip_gen: v7x
topology: tpu7x:2x2x1
jax: 0.10.0
libtpu: 0.0.40
codegen_flags: <defaults>
</compile_context>

<pallas_src>
import jax
import jax.numpy as jnp
from jax.experimental import pallas as pl
from jax.experimental.pallas import tpu as pltpu

REPS = 5  # number of stacked copies


def _mm_rep_kernel(x1_ref, x2rep_ref, out_ref):
    # Single MXU matmul: (REPS, K) @ (K, REPS*N) -> (REPS, REPS*N).
    # The column replication is already baked into x2rep, so the result is
    # lane-contiguous and stored with a single vst (no in-kernel concat).
    out_ref[...] = jnp.dot(
        x1_ref[...],
        x2rep_ref[...],
        preferred_element_type=jnp.float32,
        precision=jax.lax.Precision.HIGHEST,
    )


def model_forward(x1, x2):
    M, K = x1.shape
    K2, N = x2.shape
    assert K == K2
    assert M >= REPS, "forward requires x1.shape[0] >= 5 (v2[4] indexing in torch)"
    # Structural prep in XLA (cheap, fuses with whatever produced x1/x2):
    #  - only rows 0..4 of the matmul ever reach the output,
    #  - fold the x5 column replication into the matmul RHS.
    x1_top = x1[:REPS]                      # (REPS, K)
    x2_rep = jnp.tile(x2, (1, REPS))        # (K, REPS*N)

    out_shape = jax.ShapeDtypeStruct((REPS, REPS * N), jnp.float32)
    # No grid: a single kernel invocation with whole (tiny) arrays resident in
    # VMEM. Full-array blocks are exempt from the (8,128) divisibility rule.
    return pl.pallas_call(
        _mm_rep_kernel,
        out_shape=out_shape,
        in_specs=[
            pl.BlockSpec(memory_space=pltpu.MemorySpace.VMEM),
            pl.BlockSpec(memory_space=pltpu.MemorySpace.VMEM),
        ],
        out_specs=pl.BlockSpec(memory_space=pltpu.MemorySpace.VMEM),
    )(x1_top, x2_rep)


def model_forward_ref(x1, x2):
    # Pure-JAX mirror of the torch module, step by step.
    v1 = x1 @ x2                                               # (M, N)
    v2 = jnp.stack((v1,) * REPS, axis=1)                       # (M, 5, N)
    v3 = jnp.stack(tuple(v2[i] for i in range(REPS)), axis=0)  # (5, 5, N)
    return v3.reshape(REPS, -1)                                # (5, 5*N)


if __name__ == "__main__":
    key = jax.random.PRNGKey(0)
    k1, k2 = jax.random.split(key)
    # Same K/N as the original module (4, 3); M bumped to 8 so v2[0..4] exists.
    M, K, N = 8, 4, 3
    x1 = jax.random.normal(k1, (M, K), dtype=jnp.float32)
    x2 = jax.random.normal(k2, (K, N), dtype=jnp.float32)

    out = jax.block_until_ready(model_forward(x1, x2))

    ref = model_forward_ref(x1, x2)
    assert out.shape == (REPS, REPS * N), (out.shape, (REPS, REPS * N))
    assert ref.shape == out.shape
    assert jnp.allclose(out, ref, atol=1e-5, rtol=1e-5)
    # Sanity: equivalent closed form.
    assert jnp.allclose(out, jnp.tile((x1 @ x2)[:REPS], (1, REPS)),
                        atol=1e-5, rtol=1e-5)
    print("KERNEL_OK")
</pallas_src>

<mosaic_0001>
module attributes {stable_mosaic.version = 11 : i64} {
  func.func @_mm_rep_kernel(%arg0: memref<5x4xf32, #tpu.memory_space<vmem>>, %arg1: memref<4x15xf32, #tpu.memory_space<vmem>>, %arg2: memref<5x15xf32, #tpu.memory_space<vmem>>) attributes {dimension_semantics = [], scalar_prefetch = 0 : i64, scratch_operands = 0 : i64, tpu.core_type = #tpu.core_type<tc>} {
    %c0 = arith.constant 0 : index
    %c0_0 = arith.constant 0 : index
    %0 = vector.load %arg0[%c0, %c0_0] : memref<5x4xf32, #tpu.memory_space<vmem>>, vector<5x4xf32>
    %c0_1 = arith.constant 0 : index
    %c0_2 = arith.constant 0 : index
    %1 = vector.load %arg1[%c0_1, %c0_2] : memref<4x15xf32, #tpu.memory_space<vmem>>, vector<4x15xf32>
    %cst = arith.constant dense<0.000000e+00> : vector<5x15xf32>
    %2 = tpu.matmul %0, %1, %cst {dimension_numbers = #tpu.dot_dimension_numbers<[1], [0], [0], [1], [0, 0, 1, 1], [], []>, precision = #tpu.contract_precision<fp32>} : vector<5x4xf32>, vector<4x15xf32>, vector<5x15xf32> -> vector<5x15xf32>
    %c0_3 = arith.constant 0 : index
    %c0_4 = arith.constant 0 : index
    %3 = vector.load %arg2[%c0_3, %c0_4] : memref<5x15xf32, #tpu.memory_space<vmem>>, vector<5x15xf32>
    tpu.vector_store %arg2[%c0_3, %c0_4], %2 {strides = array<i32>} : memref<5x15xf32, #tpu.memory_space<vmem>>, vector<5x15xf32>,
    return
  }
}

</mosaic_0001>

<bundles_post_ra>
// kernel: tpu_custom_call.1
= control target key start
LH: loop header
LB: loop body
LE: loop exit
PB: predicated region body
PF: predicated region fallthrough
CT: control target
= control target key end

     0   :  { %vm18_vm0 = vcmask 1043456   ;;  %vm14_vm1 = vcmask 31744   ;;  %v562_v1 = vmov 0.0   ;;  %vm563_vm2 = vmmov 0   ;;  %s604_s0 = inlined_call_operand.vmem [shape: f32[5,4], index: 0, kind: input, shape index: {}]   ;;  %s605_s1 = inlined_call_operand.vmem [shape: f32[4,15], index: 1, kind: input, shape index: {}]   ;;  %s606_s2 = inlined_call_operand.hbm [shape: f32[5,15], index: 2, kind: output, shape index: {}]  }
   0x1   :  { %v13_v0 = vld [vmem:[%s605_s1] sm:$0xf]  ;;  %511 = vmatprep.subr.mxu0 %v562_v1  ;;  %513 = vmatprep.mubr.msk.f32.mxu0 %vm563_vm2, %v562_v1 }
   0x2   :  { %v20_v2 = vsel %vm18_vm0, %v13_v0, 0  ;;  %v12_v3 = vld [vmem:[%s604_s0] sm:$0x1f] }
   0x3   :  { %7 = vsyncpa [#allocation3], 0  ;;  %v23_v4 = vand.u32 4294901760, %v20_v2  ;;  %v16_v5 = vsel %vm14_vm1, %v12_v3, 0  ;;  %496 = vmatprep.subr.mxu1 %v562_v1  ;;  %498 = vmatprep.mubr.msk.f32.mxu1 %vm563_vm2, %v562_v1  ;;  %s564_s0 = smov [#allocation2]   ;;  %vm468_vm3 = vcmask 118784  }
   0x4   :  { %v88_v6 = vand.u32 4294901760, %v16_v5  ;;  %s476_s1 = sshll.u32 %s564_s0, 4  ;;  %s477_s1 = int_to_ptr.vmem [resolvable:$true] %s476_s1 }
   0x5   :  { %v100_v7 = vsub.f32 %v20_v2, %v23_v4  ;;  %512 = vmatpush3.msra.mxu0 %v23_v4  ;;  %497 = vmatpush3.msra.mxu1 %v23_v4  ;;  %s538_s13 = scalar_lea.vmem %s477_s1, 128  ;;  %p543_p1 = scmp.lt.s32.totalorder %s477_s1, %s477_s1 }
   0x6   :  { %v89_v8 = vsub.f32 %v16_v5, %v88_v6  ;;  %501 = vmatprep.subr.mxu1 %v562_v1  ;;  %516 = vmatprep.subr.mxu0 %v562_v1  ;;  %p539_p0 = scmp.ne.s32.totalorder %s477_s1, %s538_s13  ;;  %p544_p2 = scmp.lt.s32.totalorder %s538_s13, %s538_s13 }
   0x7   :  { %v101_v9 = vand.u32 4294901760, %v100_v7 }
   0x8   :  { %v90_v10 = vand.u32 4294901760, %v89_v8  ;;  %p545_p3 = por %p544_p2, %p543_p1 }
   0x9   :  { %v102_v11 = vsub.f32 %v100_v7, %v101_v9 }
   0xa   :  { %514 = vmatmul.mubr.f32.vlgmr.msra.gmra.mrb[0].mxu0 %v90_v10  ;;  %v91_v12 = vsub.f32 %v89_v8, %v90_v10  ;;  %p546_p4 = pnand %p545_p3, %p539_p0 }
   0xb   :  { %v103_v13 = vand.u32 4294901760, %v102_v11  ;;  %517 = vmatpush3.msra.mxu0 %v101_v9  ;;  %518 = vmatprep.mubr.msk.f32.mxu0 %vm563_vm2, %v562_v1 }
   0xc   :  { %v92_v14 = vand.u32 4294901760, %v91_v12  ;;  %521 = vmatprep.subr.mxu0 %v562_v1 }
   0xe   :  { %499 = vmatmul.mubr.f32.vlgmr.msra.gmra.mrb[0].mxu1 %v92_v14 }
   0xf   :  { %502 = vmatpush3.msra.mxu1 %v103_v13  ;;  %503 = vmatprep.mubr.msk.f32.mxu1 %vm563_vm2, %v562_v1 }
  0x10   :  { %506 = vmatprep.subr.mxu1 %v562_v1 }
  0x12   :  { %519 = vmatmul.mubr.f32.vlgmr.msra.gmra.mrb[0].mxu0 %v88_v6 }
  0x13   :  { %522 = vmatpush3.msra.mxu0 %v23_v4  ;;  %523 = vmatprep.mubr.msk.f32.mxu0 %vm563_vm2, %v562_v1 }
  0x16   :  { %504 = vmatmul.mubr.f32.vlgmr.msra.gmra.mrb[0].mxu1 %v88_v6 }
  0x17   :  { %507 = vmatpush3.msra.mxu1 %v100_v7  ;;  %508 = vmatprep.mubr.msk.f32.mxu1 %vm563_vm2, %v562_v1 }
  0x1a   :  { %524 = vmatmul.mubr.f32.vlgmr.msra.gmra.mrb[0].mxu0 %v88_v6 }
  0x1e   :  { %509 = vmatmul.mubr.f32.vlgmr.msra.gmra.mrb[0].mxu1 %v89_v8 }
  0xed   :  { %v464_v15 = vpop.f32.mrb[0].mxu0 }
  0xee   :  { %v525_v16 = vpop.f32.mrb[1].mxu0 }
  0xf1   :  { %v244_v17 = vpop.f32.mrb[0].mxu1 }
  0xf2   :  { %v526_v18 = vadd.f32 %v464_v15, %v244_v17  ;;  %v510_v19 = vpop.f32.mrb[1].mxu1 }
  0xf4   :  { %469 = vst.msk [vmem:[#allocation2] sm:$0x1f] %vm468_vm3, %v526_v18 }
  0xf5   :  { %549 = shalt.err (!%p546_p4)
}
  0xf6   :  { %s550_s16 = scalar_lea.hbm %s606_s2, 128 }
  0xf7   :  { %p551_p5 = scmp.ne.s32.totalorder %s606_s2, %s550_s16  ;;  %p554_p6 = scmp.lt.u32.totalorder %s550_s16, %s606_s2 }
  0xf9   :  { %p556_p7 = pnand %p554_p6, %p551_p5 }
  0xfb   :  { %559 = shalt.err (!%p556_p7)
}
  0xfc   :  { %479 = dma.vmem_to_hbm [thread:$0]  %s477_s1, 128, %s606_s2, [#allocation3]  }
  0xfd   :  { %560 = dma.done.wait [#allocation3], 128  }
  0xfe   :  { %561 = vsyncadd [#allocation3], 4294967168 }
  0xff   :  { %483 = vsyncpa [#allocation3], 1 }

</bundles_post_ra>
